<compile_context>
chip_gen: v6e
topology: v6e:2x2x1
jax: 0.10.0
libtpu: 0.0.40
codegen_flags: <defaults>
</compile_context>

<pallas_src>
import functools

import jax
import jax.numpy as jnp
from jax import lax
from jax.experimental import pallas as pl
from jax.experimental.pallas import tpu as pltpu

LANE = 128


def _round_up(x, m):
    return ((x + m - 1) // m) * m


# ----------------------------------------------------------------------------
# Generic stride-1 conv kernel over one output row tile.
# ----------------------------------------------------------------------------
def _conv_rows_kernel(x_ref, w_ref, b_ref, o_ref, acc_ref, *, KH, KW, T, OW, slice_rows):
    """One (T, OW, Cout) output row-tile of a stride-1 convolution.

    x_ref : (1, XR, XW, Cin) bf16.  If slice_rows: XR covers all rows (full image per
            batch element, DMA'd once) and the kernel slices its T+KH-1 row window;
            else the block is already the row tile (XR == T, used by the 1-tap path).
    w_ref : (KH*KW, Cin, Cout) bf16, tap-major.
    b_ref : (1, Cout) f32.
    o_ref : (1, T, OW, Cout).
    acc_ref: (T*OW, Cout) f32 VMEM scratch (unused when KH*KW == 1).
    """
    Cin = w_ref.shape[1]
    Cout = w_ref.shape[2]

    if slice_rows:
        row0 = pl.multiple_of(pl.program_id(1) * T, T)
        rows = x_ref[0, pl.ds(row0, T + KH - 1), :, :]
    else:
        rows = x_ref[0]

    if KH * KW == 1:
        # Single packed tap (im2col'd input): one big matmul, no accumulator needed.
        patch = rows[:T, :OW, :].reshape(T * OW, Cin)
        acc = jnp.dot(patch, w_ref[0], preferred_element_type=jnp.float32)
        acc = acc + b_ref[...]
        o_ref[...] = acc.reshape(1, T, OW, Cout).astype(o_ref.dtype)
    else:
        # Tap loop: K = Cin per matmul, accumulate in a bounded VMEM f32 scratch.
        for kh in range(KH):
            for kw in range(KW):
                patch = rows[kh:kh + T, kw:kw + OW, :].reshape(T * OW, Cin)
                contrib = jnp.dot(patch, w_ref[kh * KW + kw],
                                  preferred_element_type=jnp.float32)
                if kh == 0 and kw == 0:
                    acc_ref[...] = contrib
                else:
                    acc_ref[...] += contrib
        out = acc_ref[...] + b_ref[...]
        o_ref[...] = out.reshape(1, T, OW, Cout).astype(o_ref.dtype)


def rpn_conv3x3(x_nhwc, w_hwio, b, *, row_tile, rows_compute, rows_alloc,
                out_dtype=jnp.bfloat16, small_cin_max=64,
                vmem_limit=48 * 1024 * 1024):
    """3x3 / stride-1 / pad-1 conv + bias, row-tiled.

    Computes output rows [0, rows_compute) (rows >= H come from zero padding and are only
    used to keep tiling uniform); the output buffer has `rows_alloc` rows, the last
    rows_alloc - rows_compute rows are left unwritten (they only ever feed discarded
    border rows of the downstream coord head).
    """
    N, H, W, Cin = x_nhwc.shape
    KH, KW, _, Cout = w_hwio.shape
    T = row_tile
    assert rows_compute % T == 0 and rows_alloc >= rows_compute
    n_tiles = rows_compute // T

    xb = x_nhwc.astype(jnp.bfloat16)
    # TODO(synk): the spatial zero-pad (and im2col below) are plain-JAX wrapper glue.
    x_pad = jnp.pad(xb, ((0, 0), (1, rows_compute + 1 - H), (1, 1), (0, 0)))
    wb = w_hwio.astype(jnp.bfloat16)
    b2 = b.reshape(1, Cout).astype(jnp.float32)

    if Cin <= small_cin_max:
        # Small Cin: pack the 9 taps into the contraction dim -> one K = 9*Cin matmul.
        x_in = jnp.concatenate(
            [x_pad[:, kh:kh + rows_compute, kw:kw + W, :]
             for kh in range(KH) for kw in range(KW)], axis=-1)      # (N, Rc, W, 9*Cin)
        w_taps = wb.reshape(1, KH * KW * Cin, Cout)
        kh, kw = 1, 1
        cin_eff = KH * KW * Cin
        in_spec = pl.BlockSpec((1, T, W, cin_eff), lambda n, t: (n, t, 0, 0))
        slice_rows = False
    else:
        # Large Cin: keep taps separate (K = Cin); input stays resident per batch element.
        x_in = x_pad
        w_taps = wb.reshape(KH * KW, Cin, Cout)
        kh, kw = KH, KW
        cin_eff = Cin
        in_spec = pl.BlockSpec((1, rows_compute + KH - 1, W + KW - 1, Cin),
                               lambda n, t: (n, 0, 0, 0))
        slice_rows = True

    kern = functools.partial(_conv_rows_kernel, KH=kh, KW=kw, T=T, OW=W,
                             slice_rows=slice_rows)
    return pl.pallas_call(
        kern,
        out_shape=jax.ShapeDtypeStruct((N, rows_alloc, W, Cout), out_dtype),
        grid_spec=pltpu.PrefetchScalarGridSpec(
            num_scalar_prefetch=0,
            grid=(N, n_tiles),
            in_specs=[
                in_spec,
                pl.BlockSpec((kh * kw, cin_eff, Cout), lambda n, t: (0, 0, 0)),
                pl.BlockSpec((1, Cout), lambda n, t: (0, 0)),
            ],
            out_specs=pl.BlockSpec((1, T, W, Cout), lambda n, t: (n, t, 0, 0)),
            scratch_shapes=[pltpu.VMEM((T * W, Cout), jnp.float32)]),
        compiler_params=pltpu.CompilerParams(
            dimension_semantics=("parallel", "parallel"),
            vmem_limit_bytes=vmem_limit),
    )(x_in, w_taps, b2)


# ----------------------------------------------------------------------------
# Fused RPN heads: obj (1x1) + coord (3x3, pad=0), reading each h tile once.
# ----------------------------------------------------------------------------
def _rpn_head_kernel(h_ref, wo_ref, bo_ref, wc_ref, bc_ref,
                     obj_ref, crd_ref, acc_ref, *, T, W):
    """h_ref  : (1, R_a, W, C) bf16 -- full h for this batch element (resident in VMEM)
       wo_ref : (C, CO) bf16   1x1 obj weights, Cout zero-padded to a lane multiple
       bo_ref : (1, CO) f32
       wc_ref : (9, C, CC) bf16  3x3 coord weights (tap-major), Cout zero-padded
       bc_ref : (1, CC) f32
       obj_ref: (1, T, W, CO) f32
       crd_ref: (1, T, W-2, CC) f32
       acc_ref: (T*(W-2), CC) f32 VMEM scratch
    """
    C = wo_ref.shape[0]
    CO = wo_ref.shape[1]
    CC = wc_ref.shape[2]
    OWc = W - 2
    row0 = pl.multiple_of(pl.program_id(1) * T, T)

    # Load the T+2 h rows needed by both heads once from the resident block.
    h_rows = h_ref[0, pl.ds(row0, T + 2), :, :]                  # (T+2, W, C) bf16

    # ---- objectness head: 1x1 conv over rows [row0, row0+T) ----
    h_tile = h_rows[:T].reshape(T * W, C)
    obj = jnp.dot(h_tile, wo_ref[...], preferred_element_type=jnp.float32) + bo_ref[...]
    obj_ref[...] = obj.reshape(1, T, W, CO).astype(obj_ref.dtype)

    # ---- coordinate head: 3x3 conv (pad=0 interior) over output rows [row0, row0+T) ----
    for kh in range(3):
        for kw in range(3):
            patch = h_rows[kh:kh + T, kw:kw + OWc, :].reshape(T * OWc, C)
            contrib = jnp.dot(patch, wc_ref[kh * 3 + kw],
                              preferred_element_type=jnp.float32)
            if kh == 0 and kw == 0:
                acc_ref[...] = contrib
            else:
                acc_ref[...] += contrib
    crd = acc_ref[...] + bc_ref[...]
    crd_ref[...] = crd.reshape(1, T, OWc, CC).astype(crd_ref.dtype)


def rpn_heads(h, w_obj, b_obj, w_crd, b_crd, *, row_tile, rows_out,
              vmem_limit=48 * 1024 * 1024):
    """Fused heads; h (N, R_a, W, C) bf16 with R_a >= rows_out + 2.

    Returns (obj_full, crd_full) in f32 with lane-padded channel dims; the caller slices
    the real rows / channels.
    """
    N, R_a, W, C = h.shape
    T = row_tile
    assert rows_out % T == 0 and R_a >= rows_out + 2 and W >= 3
    CO_real = w_obj.shape[-1]          # (1,1,C,2A)
    CC_real = w_crd.shape[-1]          # (3,3,C,4A)
    CO = _round_up(CO_real, LANE)
    CC = _round_up(CC_real, LANE)

    # Zero-pad Cout to a full lane width -> unmasked, lane-dense output stores.
    wo = jnp.zeros((C, CO), jnp.bfloat16).at[:, :CO_real].set(
        w_obj.reshape(C, CO_real).astype(jnp.bfloat16))
    bo = jnp.zeros((1, CO), jnp.float32).at[:, :CO_real].set(b_obj.astype(jnp.float32))
    wc = jnp.zeros((9, C, CC), jnp.bfloat16).at[:, :, :CC_real].set(
        w_crd.reshape(9, C, CC_real).astype(jnp.bfloat16))
    bc = jnp.zeros((1, CC), jnp.float32).at[:, :CC_real].set(b_crd.astype(jnp.float32))

    kern = functools.partial(_rpn_head_kernel, T=T, W=W)
    return pl.pallas_call(
        kern,
        out_shape=(jax.ShapeDtypeStruct((N, rows_out, W, CO), jnp.float32),
                   jax.ShapeDtypeStruct((N, rows_out, W - 2, CC), jnp.float32)),
        grid_spec=pltpu.PrefetchScalarGridSpec(
            num_scalar_prefetch=0,
            grid=(N, rows_out // T),
            in_specs=[
                pl.BlockSpec((1, R_a, W, C), lambda n, t: (n, 0, 0, 0)),
                pl.BlockSpec((C, CO), lambda n, t: (0, 0)),
                pl.BlockSpec((1, CO), lambda n, t: (0, 0)),
                pl.BlockSpec((9, C, CC), lambda n, t: (0, 0, 0)),
                pl.BlockSpec((1, CC), lambda n, t: (0, 0)),
            ],
            out_specs=(pl.BlockSpec((1, T, W, CO), lambda n, t: (n, t, 0, 0)),
                       pl.BlockSpec((1, T, W - 2, CC), lambda n, t: (n, t, 0, 0))),
            scratch_shapes=[pltpu.VMEM((T * (W - 2), CC), jnp.float32)]),
        compiler_params=pltpu.CompilerParams(
            dimension_semantics=("parallel", "parallel"),
            vmem_limit_bytes=vmem_limit),
    )(h, wo, bo, wc, bc)


# ----------------------------------------------------------------------------
# RPN module wrapper (deterministic synthetic init, PyTorch NCHW interface).
# ----------------------------------------------------------------------------
class RPN:
    def __init__(self, in_channels, model_opt, key):
        self.num_anchors = model_opt['MODEL']['NUM_ANCHORS']
        ks = jax.random.split(key, 6)

        def init_conv(kw_, kb_, cin, cout, ksz):
            # Weights stored HWIO (PyTorch OIHW up to transpose).
            w = 0.05 * jax.random.normal(kw_, (ksz, ksz, cin, cout), jnp.float32)
            b = 0.02 * jax.random.normal(kb_, (cout,), jnp.float32)
            return w, b

        self.w_conv, self.b_conv = init_conv(ks[0], ks[1], in_channels, 512, 3)
        self.w_obj, self.b_obj = init_conv(ks[2], ks[3], 512, 2 * self.num_anchors, 1)
        self.w_coord, self.b_coord = init_conv(ks[4], ks[5], 512, 4 * self.num_anchors, 3)

    def __call__(self, f_map_nchw, *, row_tile=8):
        N, Cin, H, W = f_map_nchw.shape
        A = self.num_anchors
        T = min(row_tile, H)
        n_tiles = -(-H // T)
        H_pad = n_tiles * T          # rows covered by the uniform row tiling
        rows_alloc = H_pad + 2       # +2 rows of slack so the 3x3 head never reads OOB

        # TODO(synk): NCHW<->NHWC boundary transposes kept for PyTorch interface parity;
        # a real pipeline should stay NHWC end to end.
        x = jnp.transpose(f_map_nchw, (0, 2, 3, 1))

        h = rpn_conv3x3(x, self.w_conv, self.b_conv, row_tile=T,
                        rows_compute=H_pad, rows_alloc=rows_alloc)
        obj_f, crd_f = rpn_heads(h, self.w_obj, self.b_obj, self.w_coord, self.b_coord,
                                 row_tile=T, rows_out=H_pad)

        obj = obj_f[:, :H, :, :2 * A]
        crd = crd_f[:, :H - 2, :, :4 * A]
        return (jnp.transpose(obj, (0, 3, 1, 2)),
                jnp.transpose(crd, (0, 3, 1, 2)))


# ----------------------------------------------------------------------------
# Pure-JAX reference (same bf16-input / f32-accumulate numerics as the kernels).
# ----------------------------------------------------------------------------
def _ref_conv_nhwc(x, w, b, pad):
    y = lax.conv_general_dilated(
        x.astype(jnp.bfloat16), w.astype(jnp.bfloat16), (1, 1),
        [(pad, pad), (pad, pad)],
        dimension_numbers=('NHWC', 'HWIO', 'NHWC'),
        preferred_element_type=jnp.float32)
    return y + b.astype(jnp.float32)


def _check(rpn, f_map, rtol=1e-2, atol=1e-2):
    obj_map, coord_map = rpn(f_map)
    obj_map = jax.block_until_ready(obj_map)
    coord_map = jax.block_until_ready(coord_map)

    x_nhwc = jnp.transpose(f_map, (0, 2, 3, 1))
    h_ref = _ref_conv_nhwc(x_nhwc, rpn.w_conv, rpn.b_conv, 1).astype(jnp.bfloat16)
    obj_ref = jnp.transpose(_ref_conv_nhwc(h_ref, rpn.w_obj, rpn.b_obj, 0), (0, 3, 1, 2))
    crd_ref = jnp.transpose(_ref_conv_nhwc(h_ref, rpn.w_coord, rpn.b_coord, 0), (0, 3, 1, 2))

    assert obj_map.shape == obj_ref.shape, (obj_map.shape, obj_ref.shape)
    assert coord_map.shape == crd_ref.shape, (coord_map.shape, crd_ref.shape)
    assert jnp.allclose(obj_map, obj_ref, rtol=rtol, atol=atol)
    assert jnp.allclose(coord_map, crd_ref, rtol=rtol, atol=atol)
    return obj_map, coord_map


if __name__ == "__main__":
    key = jax.random.PRNGKey(0)
    k_param, k_inp, k_param2, k_inp2 = jax.random.split(key, 4)
    model_opt = {'MODEL': {'NUM_ANCHORS': 3}}

    # Main config (small-Cin im2col conv path + fused heads).
    N, C_IN, H, W = 2, 4, 16, 16
    rpn = RPN(C_IN, model_opt, k_param)
    f_map = jax.random.normal(k_inp, (N, C_IN, H, W), jnp.float32)
    obj_map, coord_map = _check(rpn, f_map)
    assert obj_map.shape == (N, 2 * 3, H, W)
    assert coord_map.shape == (N, 4 * 3, H - 2, W - 2)

    # Secondary tiny config exercising the large-Cin tap-loop conv path.
    N2, C2, H2, W2 = 1, 128, 8, 8
    rpn2 = RPN(C2, model_opt, k_param2)
    f_map2 = jax.random.normal(k_inp2, (N2, C2, H2, W2), jnp.float32)
    _check(rpn2, f_map2)

    print("KERNEL_OK")
</pallas_src>

<mosaic_0001>
module attributes {stable_mosaic.version = 11 : i64} {
  func.func @_conv_rows_kernel(%arg0: i32, %arg1: i32, %arg2: memref<1x8x16x36xbf16, #tpu.memory_space<vmem>>, %arg3: memref<1x36x512xbf16, #tpu.memory_space<vmem>>, %arg4: memref<1x512xf32, #tpu.memory_space<vmem>>, %arg5: memref<1x8x16x512xbf16, #tpu.memory_space<vmem>>, %arg6: memref<128x512xf32, #tpu.memory_space<vmem>>) attributes {dimension_semantics = [#tpu.dimension_semantics<parallel>, #tpu.dimension_semantics<parallel>], iteration_bounds = array<i64: 2, 2>, scalar_prefetch = 0 : i64, scratch_operands = 1 : i64, tpu.core_type = #tpu.core_type<tc>, window_params = [{transform_indices = @transform_0, window_bounds = array<i64: 1, 8, 16, 36>}, {pipeline_mode = #tpu.pipeline_mode<synchronous>, transform_indices = @transform_1, window_bounds = array<i64: 1, 36, 512>}, {pipeline_mode = #tpu.pipeline_mode<synchronous>, transform_indices = @transform_2, window_bounds = array<i64: 1, 512>}, {transform_indices = @transform_3, window_bounds = array<i64: 1, 8, 16, 512>}]} {
    %c0 = arith.constant 0 : index
    %c0_0 = arith.constant 0 : index
    %c0_1 = arith.constant 0 : index
    %c0_2 = arith.constant 0 : index
    %0 = vector.load %arg2[%c0, %c0_0, %c0_1, %c0_2] : memref<1x8x16x36xbf16, #tpu.memory_space<vmem>>, vector<1x8x16x36xbf16>
    %1 = vector.shape_cast %0 : vector<1x8x16x36xbf16> to vector<8x16x36xbf16>
    %2 = vector.shape_cast %1 : vector<8x16x36xbf16> to vector<128x36xbf16>
    %c0_3 = arith.constant 0 : index
    %c0_4 = arith.constant 0 : index
    %c0_5 = arith.constant 0 : index
    %3 = vector.load %arg3[%c0_3, %c0_4, %c0_5] : memref<1x36x512xbf16, #tpu.memory_space<vmem>>, vector<1x36x512xbf16>
    %4 = vector.shape_cast %3 : vector<1x36x512xbf16> to vector<36x512xbf16>
    %cst = arith.constant dense<0.000000e+00> : vector<128x512xf32>
    %5 = tpu.matmul %2, %4, %cst {dimension_numbers = #tpu.dot_dimension_numbers<[1], [0], [0], [1], [0, 0, 1, 1], [], []>} : vector<128x36xbf16>, vector<36x512xbf16>, vector<128x512xf32> -> vector<128x512xf32>
    %c0_6 = arith.constant 0 : index
    %c0_7 = arith.constant 0 : index
    %6 = vector.load %arg4[%c0_6, %c0_7] : memref<1x512xf32, #tpu.memory_space<vmem>>, vector<1x512xf32>
    %7 = vector.broadcast %6 : vector<1x512xf32> to vector<128x512xf32>
    %8 = arith.addf %5, %7 : vector<128x512xf32>
    %9 = vector.shape_cast %8 : vector<128x512xf32> to vector<1x8x16x512xf32>
    %10 = arith.truncf %9 : vector<1x8x16x512xf32> to vector<1x8x16x512xbf16>
    %c0_8 = arith.constant 0 : index
    %c0_9 = arith.constant 0 : index
    %c0_10 = arith.constant 0 : index
    %c0_11 = arith.constant 0 : index
    %11 = vector.load %arg5[%c0_8, %c0_9, %c0_10, %c0_11] : memref<1x8x16x512xbf16, #tpu.memory_space<vmem>>, vector<1x8x16x512xbf16>
    tpu.vector_store %arg5[%c0_8, %c0_9, %c0_10, %c0_11], %10 {strides = array<i32>} : memref<1x8x16x512xbf16, #tpu.memory_space<vmem>>, vector<1x8x16x512xbf16>,
    return
  }
  func.func @transform_0(%arg0: i32, %arg1: i32) -> (i32, i32, i32, i32) {
    %c0_i32 = arith.constant 0 : i32
    %c0_i32_0 = arith.constant 0 : i32
    %c0_i32_1 = arith.constant 0 : i32
    return %arg0, %arg1, %c0_i32, %c0_i32_0 : i32, i32, i32, i32
  }
  func.func @transform_1(%arg0: i32, %arg1: i32) -> (i32, i32, i32) {
    %c0_i32 = arith.constant 0 : i32
    %c0_i32_0 = arith.constant 0 : i32
    %c0_i32_1 = arith.constant 0 : i32
    %c0_i32_2 = arith.constant 0 : i32
    return %c0_i32, %c0_i32_0, %c0_i32_1 : i32, i32, i32
  }
  func.func @transform_2(%arg0: i32, %arg1: i32) -> (i32, i32) {
    %c0_i32 = arith.constant 0 : i32
    %c0_i32_0 = arith.constant 0 : i32
    %c0_i32_1 = arith.constant 0 : i32
    return %c0_i32, %c0_i32_0 : i32, i32
  }
  func.func @transform_3(%arg0: i32, %arg1: i32) -> (i32, i32, i32, i32) {
    %c0_i32 = arith.constant 0 : i32
    %c0_i32_0 = arith.constant 0 : i32
    %c0_i32_1 = arith.constant 0 : i32
    return %arg0, %arg1, %c0_i32, %c0_i32_0 : i32, i32, i32, i32
  }
}

</mosaic_0001>

<bundles_post_ra>
// kernel: tpu_custom_call.1
= control target key start
LH: loop header
LB: loop body
LE: loop exit
PB: predicated region body
PF: predicated region fallthrough
CT: control target
= control target key end

     0   :  { %s1863_s0 = inlined_call_operand.hbm [shape: bf16[2,16,16,36], index: 0, kind: input, shape index: {}]   ;;  %s1864_s1 = inlined_call_operand.hbm [shape: bf16[1,36,512], index: 1, kind: input, shape index: {}]   ;;  %s1865_s2 = inlined_call_operand.hbm [shape: f32[1,512], index: 2, kind: input, shape index: {}]   ;;  %s1866_s3 = inlined_call_operand.hbm [shape: bf16[2,18,16,512], index: 3, kind: output, shape index: {}]  }
   0x1   :  { %1874 = sst [smem:[#allocation16_spill]] %s1864_s1 }
   0x2   :  { %1875 = sst [smem:[#allocation17_spill]] %s1865_s2 }
   0x3   :  { %1876 = sst [smem:[#allocation18_spill]] %s1866_s3 }
   0x4   :  { %8 = vsyncpa [#allocation4], 0 }
   0x5   :  { %10 = vsyncpa [#allocation4 + $0x1], 0 }
   0x6   :  { %11 = vsyncpa [#allocation7], 0 }
   0x7   :  { %12 = vsyncpa [#allocation5], 0 }
   0x8   :  { %14 = vsyncpa [#allocation5 + $0x1], 0  ;;  %s1485_s12 = smov 0   ;;  %s1487_s13 = smov 0  }
   0x9   :  { %s1489_s14 = smov 0   ;;  %s1491_s15 = smov 0  }
   0xa   :  { %s1493_s16 = smov 0   ;;  %s1495_s17 = smov 0  }
   0xb   :  { %s1497_s18 = smov 0   ;;  %s1499_s19 = smov 0  }
   0xc LB: > { %1877 = sst [smem:[#allocation13_spill]] %s1424_s12  ;;  %s1005_s20 = sadd.s32 4294967295, %s1452_s19   ;;  %s1452_s19 = sphi %s1499_s19, %s20_s19   ;;  %s1448_s18 = sphi %s1497_s18, %s1904_s18   ;;  %s1444_s17 = sphi %s1495_s17, %s1903_s17   ;;  %s1440_s16 = sphi %s1493_s16, %s1902_s16   ;;  %s1436_s15 = sphi %s1491_s15, %s1901_s15   ;;  %s1432_s14 = sphi %s1489_s14, %s1900_s14   ;;  %s1428_s13 = sphi %s1487_s13, %s1899_s13   ;;  %s1424_s12 = sphi %s1485_s12, %s1898_s12  }
   0xd   : > { %s1006_s21 = sadd.s32 4294967294, %s1452_s19   ;;  %p54_p0 = scmp.ne.s32.totalorder %s1428_s13, %s1424_s12 }
   0xe   : > { %p1529_p1 = scmp.eq.s32.totalorder %s1005_s20, 0  ;;  %p1533_p2 = scmp.eq.s32.totalorder %s1005_s20, 3 }
   0xf   : > { %p128_p3 = scmp.eq.s32.totalorder %s1006_s21, 3  ;;  %p1007_p5 = scmp.ge.s32.totalorder %s1452_s19, 1 }
  0x10   : > { %s1878_s22 = scalar_select %p1529_p1, 1, 0 }
  0x11   : > { %p1539_p4 = por %p1529_p1, %p54_p0  ;;  %p1544_p6 = por %p128_p3, %p54_p0 }
  0x12   : > { %p135_p7 = scmp.lt.s32.totalorder %s1452_s19, 5  ;;  %s1454_s27 = smov [#allocation6]  }
  0x13   : > { %s1880_s24 = scalar_select %p1539_p4, 1, 0 }
  0x14   : > { %s1881_s25 = scalar_select %p1544_p6, 1, 0 }
  0x15   : > { %p1549_p8 = pnand %p1007_p5, %p135_p7  ;;  %s147_s28 = sshll.u32 %s1454_s27, 4  ;;  %s148_s28 = int_to_ptr.vmem [resolvable:$true] %s147_s28 }
  0x16   : > { %1882 = sst [smem:[#allocation14_spill]] %s1881_s25  ;;  %s1455_s30 = smov [#allocation8]  }
  0x17   : > { %p1154_p9 = pneg %p1549_p8  ;;  %s161_s4 = sshll.u32 %s1455_s30, 4  ;;  %s162_s4 = int_to_ptr.vmem [resolvable:$true] %s161_s4 }
  0x18   : > { %s1283_s5 = scalar_lea.vmem %s148_s28, 1280  ;;  %p1291_p3 = scmp.lt.s32.totalorder %s148_s28, %s148_s28 }
  0x19   : > { %p1557_p10 = pnand %p1154_p9, %p1529_p1  ;;  %p1284_p12 = scmp.ne.s32.totalorder %s148_s28, %s1283_s5 }
  0x1a   : > { %p1292_p5 = scmp.lt.s32.totalorder %s1283_s5, %s1283_s5 }
  0x1b   : > { %p1274_p11 = pneg %p1557_p10 }
  0x1c   : > { %p1293_p7 = por %p1292_p5, %p1291_p3 }
  0x1d   : > { %p1286_p13 = pnand %p1284_p12, %p1274_p11 }
  0x1f   : > { %p1287_p0 = pneg %p1286_p13 }
  0x21   : > { %p1294_p9 = pnand %p1293_p7, %p1287_p0 }
  0x23   : > { %1297 = shalt.err (!%p1294_p9)
}
  0x24   : > { %s1456_s6 = smov 256   ;;  %s1457_s7 = smov 16  }
  0x25   : > { %s1885_s1 = sld [smem:[#allocation16_spill]]  ;;  %s1309_s10 = scalar_lea.vmem %s162_s4, 64 }
  0x26   : > { %p1310_p6 = scmp.ne.s32.totalorder %s162_s4, %s1309_s10  ;;  %p1317_p1 = scmp.lt.s32.totalorder %s162_s4, %s162_s4 }
  0x27   : > { %p1318_p4 = scmp.lt.s32.totalorder %s1309_s10, %s1309_s10 }
  0x28   : > { %p1312_p12 = pnand %p1310_p6, %p1274_p11 }
  0x29   : > { %p1319_p3 = por %p1318_p4, %p1317_p1 }
  0x2a   : > { %p1313_p13 = pneg %p1312_p12 }
  0x2b   : > { %1157 = dma.hbm_to_vmem [thread:$0]  (!%p1557_p10), %s1885_s1, 1280, %s148_s28, [#allocation7], %s1456_s6, %s1456_s6, %s1457_s7  }
  0x2c   : > { %p1320_p0 = pnand %p1319_p3, %p1313_p13 }
  0x2e   : > { %1323 = shalt.err (!%p1320_p0)
}
  0x2f   : > { %s1886_s2 = sld [smem:[#allocation17_spill]]  ;;  %s29_s21 = sadd.s32 1, %s1444_s17 }
  0x30   : > { %s32_s27 = sadd.s32 1, %s1448_s18  ;;  %p30_p1 = scmp.ge.s32.totalorder %s29_s21, 2 }
  0x31   : > { %s41_s28 = sadd.s32 1, %s1432_s14  ;;  %p48_p4 = scmp.ne.s32.totalorder %s1432_s14, %s1428_s13 }
  0x32   : > { %p49_p6 = scmp.eq.s32.totalorder %s1452_s19, 0  ;;  %s1906_s21 = smov (%p30_p1, %s29_s21), 0 }
  0x33   : > { %1887 = sst [smem:[#allocation15_spill]] %s1906_s21  ;;  %s1908_s27 = smov (!%p30_p1, %s32_s27), %s1448_s18 }
  0x34   : > { %s37_s29 = ssub.s32 %s1444_s17, %s1906_s21  ;;  %p1590_p11 = por %p49_p6, %p48_p4 }
  0x35   : > { %1160 = dma.hbm_to_vmem [thread:$0]  (!%p1557_p10), %s1886_s2, 64, %s162_s4, [#allocation7]  }
  0x36   : > { %p34_p10 = scmp.ge.s32.totalorder %s1908_s27, 2  ;;  %p1596_p5 = por %p1533_p2, %p48_p4 }
  0x37   : > { %p1171_p7 = scmp.lt.s32.totalorder %s1452_s19, 4  ;;  %s172_s5 = sand.u32 1, %s1432_s14  }
  0x38   : > { %s1910_s27 = smov (%p34_p10, %s1908_s27), 0  ;;  %s1011_s6 = sshll.u32 %s172_s5, 6 }
  0x39   : > { %s36_s7 = ssub.s32 %s1448_s18, %s1910_s27  ;;  %s1104_s9 = sshll.u32 %s1444_s17, 4 }
  0x3a   : > { %s38_s8 = sor.u32 %s37_s29, %s36_s7  ;;  %s1014_s10 = sshll.u32 %s1448_s18, 5 }
  0x3b   : > { %p39_p9 = scmp.eq.s32.totalorder %s38_s8, 0  ;;  %s183_s11 = sadd.s32 %s1104_s9, %s1014_s10 }
  0x3c   : > { %s176_s20 = scalar_lea.vmem [#allocation3], %s1011_s6  ;;  %s1015_s2 = sshll.u32 %s183_s11, 6 }
  0x3d   : > { %s186_s23 = sshll.u32 %s176_s20, 4  ;;  %s185_s12 = scalar_lea.hbm %s1863_s0, %s1015_s2  ;;  %s187_s23 = int_to_ptr.vmem [resolvable:$true] %s186_s23 }
  0x3e   : > { %s1609_s1 = scalar_select %p39_p9, %s1432_s14, %s41_s28  }
  0x3f   : > { %p1618_p2 = pnand %p1171_p7, %p1590_p11  ;;  %s173_s29 = scalar_lea.sflag [#allocation4], %s172_s5 }
  0x40   : > { %s1337_s6 = scalar_lea.vmem %s187_s23, 1024  ;;  %s1458_s28 = smov [#allocation3]  }
  0x41   : > { %p1326_p12 = pneg %p1618_p2  ;;  %p1338_p13 = scmp.ne.s32.totalorder %s187_s23, %s1337_s6 }
  0x42   : > { %s1342_s7 = sshll.u32 %s1458_s28, 4  ;;  %s1343_s7 = int_to_ptr.vmem [resolvable:$false] %s1342_s7 }
  0x43   : > { %p1340_p3 = pnand %p1338_p13, %p1326_p12  ;;  %s1344_s8 = scalar_lea.vmem %s1343_s7, 2048 }
  0x44   : > { %p1345_p1 = scmp.lt.s32.totalorder %s187_s23, %s1343_s7  ;;  %p1346_p4 = scmp.lt.s32.totalorder %s1344_s8, %s1337_s6 }
  0x45   : > { %p1341_p0 = pneg %p1340_p3 }
  0x46   : > { %p1347_p6 = por %p1346_p4, %p1345_p1 }
  0x48   : > { %p1348_p10 = pnand %p1347_p6, %p1341_p0 }
  0x4a   : > { %1351 = shalt.err (!%p1348_p10)
}
  0x4b   : > { %s1459_s2 = smov 64   ;;  %s1460_s25 = smov 4  }
  0x4c   : > { %1164 = dma.hbm_to_vmem [thread:$0]  (!%p1618_p2), %s185_s12, 1024, %s187_s23, %s173_s29, %s1459_s2, %s1459_s2, %s1460_s25  }
  0x4d   : > { %198 = sbr.rel (%p1549_p8) target bundleno = 391 (0x187), region = 32  ;;  %s1629_s21 = sand.u32 (!%p1549_p8), 1, %s1428_s13  }
  0x4e   : > { %s1017_s30 = sshll.u32 (!%p1549_p8), %s1629_s21, 6  ;;  %s201_s5 = scalar_lea.sflag (!%p1549_p8), [#allocation4], %s1629_s21 }
  0x4f   : > { %s1633_s9 = scalar_lea.vmem (!%p1549_p8), [#allocation3], %s1017_s30  ;;  %p1891_p11 = scmp.ne.s32.totalorder (!%p1549_p8), %s1880_s24, 0 }
  0x52   : > { %1411 = dma.done.wait (%p1891_p11), %s201_s5, 1024  }
  0x53   : > { %1413 = vsyncadd (%p1891_p11), %s201_s5, 4294966272  ;;  %p1892_p7 = scmp.ne.s32.totalorder %s1878_s22, 0 }
  0x55   : > { %1415 = dma.done.wait (%p1892_p7), [#allocation7], 1344  }
  0x56   : > { %1417 = vsyncadd (%p1892_p7), [#allocation7], 4294965952  ;;  %v1461_v0 = vmov 0   ;;  %v268_v1 = vld [vmem:[#allocation6 + $0x40] sm:$0x33]  ;;  %vm407_vm0 = vcmask 1041408   ;;  %v272_v25 = vlaneseq }
  0x57   : > { %452 = vmatprep.mubr.bf16.mxu0 %v1461_v0  ;;  %565 = vmatprep.mubr.bf16.mxu1 %v1461_v0  ;;  %v269_v2 = vld [vmem:[#allocation6 + $0x48] sm:$0x33]  ;;  %v1038_v3 = vcombine.high %v268_v1, %v268_v1  ;;  %v1037_v5 = vcombine.low %v268_v1, %v268_v1  ;;  %v1252_v7 = vld [vmem:[#allocation6 + $0x24] ss:$16 sps:$4 sm:$0xff]   ;;  %v1256_v11 = vld [vmem:[#allocation6 + $0x20] ss:$16 sps:$4 sm:$0xff]  }
  0x58   : > { %v1040_v4 = vcombine.high %v269_v2, %v269_v2  ;;  %v1039_v6 = vcombine.low %v269_v2, %v269_v2  ;;  %v1254_v8 = vld [vmem:[#allocation6 + $0x2c] ss:$16 sps:$4 sm:$0xff]   ;;  %v1257_v12 = vld [vmem:[#allocation6 + $0x28] ss:$16 sps:$4 sm:$0xff]   ;;  %v1258_v13 = vld [vmem:[#allocation6 + $0x4] ss:$16 sps:$4 sm:$0xff]  }
  0x59   : > { %1041 = vmatprep.subr.msk.bf16.mxu0 %vm407_vm0, %v1038_v3  ;;  %v409_v9 = vsel %vm407_vm0, %v1037_v5, 0  ;;  %v1260_v14 = vld [vmem:[#allocation6 + $0xc] ss:$16 sps:$4 sm:$0xff]   ;;  %v1262_v15 = vld [vmem:[#allocation6] ss:$16 sps:$4 sm:$0xff]   ;;  %vm382_vm1 = vcmask 293888  }
  0x5a   : > { %1050 = vmatprep.subr.msk.bf16.mxu1 %vm407_vm0, %v1040_v4  ;;  %v415_v10 = vsel %vm407_vm0, %v1039_v6, 0  ;;  %431 = vmatpush1.bf16.msra.mxu0 %v409_v9  ;;  %v1263_v16 = vld [vmem:[#allocation6 + $0x8] ss:$16 sps:$4 sm:$0xff]   ;;  %v1264_v17 = vld [vmem:[%s1633_s9] sm:$0xff]   ;;  %v1266_v19 = vld [vmem:[%s1633_s9 + $0x10] sm:$0xff]   ;;  %v273_v26 = vshrl.u32 %v272_v25, 7 }
  0x5b   : > { %544 = vmatpush1.bf16.msra.mxu1 %v415_v10  ;;  %432 = vmatprep.subr.bf16.mxu0 %v1252_v7  ;;  %v1265_v18 = vld [vmem:[%s1633_s9 + $0x8] sm:$0xff]   ;;  %v1267_v20 = vld [vmem:[%s1633_s9 + $0x18] sm:$0xff]   ;;  %v1268_v21 = vld [vmem:[%s1633_s9 + $0x20] sm:$0xff]   ;;  %s1020_s3 = sshll.u32 %s1629_s21, 8  ;;  %s871_s22 = scalar_lea.sflag [#allocation5], %s1629_s21 }
  0x5c   : > { %545 = vmatprep.subr.bf16.mxu1 %v1254_v8  ;;  %v1269_v22 = vld [vmem:[%s1633_s9 + $0x28] sm:$0xff]   ;;  %v1270_v23 = vld [vmem:[%s1633_s9 + $0x30] sm:$0xff]   ;;  %v1271_v24 = vld [vmem:[%s1633_s9 + $0x38] sm:$0xff]   ;;  %v274_v27 = vsub.s32 0, %v273_v26  ;;  %v282_v28 = vsub.s32 2, %v273_v26  ;;  %v278_v29 = vsub.s32 1, %v273_v26 }
  0x5d   : > { %v286_v30 = vsub.s32 3, %v273_v26  ;;  %v270_v31 = vld [vmem:[#allocation8] sm:$0xf]  ;;  %s1696_s12 = scalar_lea.vmem [#allocation9], %s1020_s3  ;;  %s1092_s24 = sshll.u32 (%p1596_p5), %s1436_s15, 3 }
  0x5e   : > { %433 = vmatpush1.bf16.msra.mxu0 %v1256_v11  ;;  %v1683_v32 = vrot.slane %v270_v31, %v274_v27  ;;  %v1685_v33 = vrot.slane %v270_v31, %v282_v28  ;;  %v1687_v34 = vrot.slane %v270_v31, %v278_v29  ;;  %s879_s26 = ssub.s32 (%p1596_p5), 18, %s1092_s24 }
  0x5f   : > { %546 = vmatpush1.bf16.msra.mxu1 %v1257_v12  ;;  %434 = vmatprep.subr.bf16.mxu0 %v1258_v13  ;;  %v1689_v35 = vrot.slane %v270_v31, %v286_v30  ;;  %p880_p8 = scmp.lt.s32.totalorder (%p1596_p5), %s879_s26, 8 }
  0x60   : > { %547 = vmatprep.subr.bf16.mxu1 %v1260_v14 }
  0x62   : > { %435 = vmatpush1.bf16.msra.mxu0 %v1262_v15 }
  0x63   : > { %548 = vmatpush1.bf16.msra.mxu1 %v1263_v16 }
  0x65   : > { %1042 = vmatmul.mubr.msk.bf16.vlgmr.msra.gmra.mxu0 %vm382_vm1, %v1264_v17 }
  0x66   : > { %1051 = vmatmul.mubr.msk.bf16.vlgmr.msra.gmra.mxu1 %vm382_vm1, %v1264_v17  ;;  %462 = vmatprep.mubr.bf16.mxu0 %v1461_v0 }
  0x67   : > { %575 = vmatprep.mubr.bf16.mxu1 %v1461_v0 }
  0x6d   : > { %1043 = vmatmul.mubr.msk.bf16.gmra.mxu0 %vm382_vm1, %v1265_v18 }
  0x6e   : > { %1052 = vmatmul.mubr.msk.bf16.gmra.mxu1 %vm382_vm1, %v1265_v18  ;;  %472 = vmatprep.mubr.bf16.mxu0 %v1461_v0 }
  0x6f   : > { %585 = vmatprep.mubr.bf16.mxu1 %v1461_v0 }
  0x75   : > { %1044 = vmatmul.mubr.msk.bf16.gmra.mxu0 %vm382_vm1, %v1266_v19 }
  0x76   : > { %1053 = vmatmul.mubr.msk.bf16.gmra.mxu1 %vm382_vm1, %v1266_v19  ;;  %482 = vmatprep.mubr.bf16.mxu0 %v1461_v0 }
  0x77   : > { %595 = vmatprep.mubr.bf16.mxu1 %v1461_v0 }
  0x7d   : > { %1045 = vmatmul.mubr.msk.bf16.gmra.mxu0 %vm382_vm1, %v1267_v20 }
  0x7e   : > { %1054 = vmatmul.mubr.msk.bf16.gmra.mxu1 %vm382_vm1, %v1267_v20  ;;  %492 = vmatprep.mubr.bf16.mxu0 %v1461_v0 }
  0x7f   : > { %605 = vmatprep.mubr.bf16.mxu1 %v1461_v0 }
  0x85   : > { %1046 = vmatmul.mubr.msk.bf16.gmra.mxu0 %vm382_vm1, %v1268_v21 }
  0x86   : > { %1055 = vmatmul.mubr.msk.bf16.gmra.mxu1 %vm382_vm1, %v1268_v21  ;;  %502 = vmatprep.mubr.bf16.mxu0 %v1461_v0 }
  0x87   : > { %615 = vmatprep.mubr.bf16.mxu1 %v1461_v0 }
  0x8d   : > { %1047 = vmatmul.mubr.msk.bf16.gmra.mxu0 %vm382_vm1, %v1269_v22 }
  0x8e   : > { %1056 = vmatmul.mubr.msk.bf16.gmra.mxu1 %vm382_vm1, %v1269_v22  ;;  %512 = vmatprep.mubr.bf16.mxu0 %v1461_v0 }
  0x8f   : > { %625 = vmatprep.mubr.bf16.mxu1 %v1461_v0 }
  0x95   : > { %1048 = vmatmul.mubr.msk.bf16.gmra.mxu0 %vm382_vm1, %v1270_v23 }
  0x96   : > { %1057 = vmatmul.mubr.msk.bf16.gmra.mxu1 %vm382_vm1, %v1270_v23  ;;  %522 = vmatprep.mubr.bf16.mxu0 %v1461_v0 }
  0x97   : > { %635 = vmatprep.mubr.bf16.mxu1 %v1461_v0 }
  0x9d   : > { %1049 = vmatmul.mubr.msk.bf16.gmra.mxu0 %vm382_vm1, %v1271_v24 }
  0x9e   : > { %1058 = vmatmul.mubr.msk.bf16.gmra.mxu1 %vm382_vm1, %v1271_v24 }
 0x125   : > { %v454_v36 = vpop.f32.mrf.mxu0 }
 0x126   : > { %v567_v37 = vpop.f32.mrf.mxu1  ;;  %v455_v40 = vadd.f32 %v454_v36, %v1683_v32 }
 0x127   : > { %v456_v38 = vpop.f32.mrf.mxu0  ;;  %v568_v41 = vadd.f32 %v567_v37, %v1685_v33 }
 0x128   : > { %v569_v39 = vpop.f32.mrf.mxu1  ;;  %v457_v42 = vadd.f32 %v456_v38, %v1687_v34 }
 0x129   : > { %v570_v43 = vadd.f32 %v569_v39, %v1689_v35  ;;  %v458_v44 = vpop.f32.mrf.mxu0 }
 0x12a   : > { %v571_v45 = vpop.f32.mrf.mxu1  ;;  %v1105_v46 = vpack.c.bf16 %v457_v42, %v455_v40  ;;  %v459_v50 = vadd.f32 %v458_v44, %v1683_v32 }
 0x12b   : > { %v1106_v47 = vpack.c.bf16 %v570_v43, %v568_v41  ;;  %v460_v48 = vpop.f32.mrf.mxu0  ;;  %v572_v51 = vadd.f32 %v571_v45, %v1685_v33 }
 0x12c   : > { %v573_v49 = vpop.f32.mrf.mxu1  ;;  %838 = vst [vmem:[%s1696_s12] sm:$0xff] %v1105_v46  ;;  %v461_v52 = vadd.f32 %v460_v48, %v1687_v34 }
 0x12d   : > { %839 = vst [vmem:[%s1696_s12 + $0x8] sm:$0xff] %v1106_v47  ;;  %v574_v53 = vadd.f32 %v573_v49, %v1689_v35  ;;  %v464_v54 = vpop.f32.mrf.mxu0 }
 0x12e   : > { %v577_v55 = vpop.f32.mrf.mxu1  ;;  %v1107_v56 = vpack.c.bf16 %v461_v52, %v459_v50  ;;  %v465_v60 = vadd.f32 %v464_v54, %v1683_v32 }
 0x12f   : > { %v1108_v57 = vpack.c.bf16 %v574_v53, %v572_v51  ;;  %v466_v58 = vpop.f32.mrf.mxu0  ;;  %v578_v61 = vadd.f32 %v577_v55, %v1685_v33 }
 0x130   : > { %v579_v59 = vpop.f32.mrf.mxu1  ;;  %840 = vst [vmem:[%s1696_s12 + $0x10] sm:$0xff] %v1107_v56  ;;  %v467_v62 = vadd.f32 %v466_v58, %v1687_v34 }
 0x131   : > { %841 = vst [vmem:[%s1696_s12 + $0x18] sm:$0xff] %v1108_v57  ;;  %v580_v63 = vadd.f32 %v579_v59, %v1689_v35  ;;  %v468_v0 = vpop.f32.mrf.mxu0 }
 0x132   : > { %v581_v1 = vpop.f32.mrf.mxu1  ;;  %v1109_v2 = vpack.c.bf16 %v467_v62, %v465_v60  ;;  %v469_v6 = vadd.f32 %v468_v0, %v1683_v32 }
 0x133   : > { %v1110_v3 = vpack.c.bf16 %v580_v63, %v578_v61  ;;  %v470_v4 = vpop.f32.mrf.mxu0  ;;  %v582_v7 = vadd.f32 %v581_v1, %v1685_v33 }
 0x134   : > { %v583_v5 = vpop.f32.mrf.mxu1  ;;  %842 = vst [vmem:[%s1696_s12 + $0x20] sm:$0xff] %v1109_v2  ;;  %v471_v8 = vadd.f32 %v470_v4, %v1687_v34 }
 0x135   : > { %843 = vst [vmem:[%s1696_s12 + $0x28] sm:$0xff] %v1110_v3  ;;  %v584_v9 = vadd.f32 %v583_v5, %v1689_v35  ;;  %v474_v10 = vpop.f32.mrf.mxu0 }
 0x136   : > { %v587_v11 = vpop.f32.mrf.mxu1  ;;  %v1111_v12 = vpack.c.bf16 %v471_v8, %v469_v6  ;;  %v475_v16 = vadd.f32 %v474_v10, %v1683_v32 }
 0x137   : > { %v1112_v13 = vpack.c.bf16 %v584_v9, %v582_v7  ;;  %v476_v14 = vpop.f32.mrf.mxu0  ;;  %v588_v17 = vadd.f32 %v587_v11, %v1685_v33 }
 0x138   : > { %v589_v15 = vpop.f32.mrf.mxu1  ;;  %844 = vst [vmem:[%s1696_s12 + $0x30] sm:$0xff] %v1111_v12  ;;  %v477_v18 = vadd.f32 %v476_v14, %v1687_v34 }
 0x139   : > { %845 = vst [vmem:[%s1696_s12 + $0x38] sm:$0xff] %v1112_v13  ;;  %v590_v19 = vadd.f32 %v589_v15, %v1689_v35  ;;  %v478_v20 = vpop.f32.mrf.mxu0 }
 0x13a   : > { %v591_v21 = vpop.f32.mrf.mxu1  ;;  %v1113_v22 = vpack.c.bf16 %v477_v18, %v475_v16  ;;  %v479_v26 = vadd.f32 %v478_v20, %v1683_v32 }
 0x13b   : > { %v1114_v23 = vpack.c.bf16 %v590_v19, %v588_v17  ;;  %v480_v24 = vpop.f32.mrf.mxu0  ;;  %v592_v27 = vadd.f32 %v591_v21, %v1685_v33 }
 0x13c   : > { %v593_v25 = vpop.f32.mrf.mxu1  ;;  %846 = vst [vmem:[%s1696_s12 + $0x40] sm:$0xff] %v1113_v22  ;;  %v481_v28 = vadd.f32 %v480_v24, %v1687_v34 }
 0x13d   : > { %847 = vst [vmem:[%s1696_s12 + $0x48] sm:$0xff] %v1114_v23  ;;  %v594_v29 = vadd.f32 %v593_v25, %v1689_v35  ;;  %v484_v30 = vpop.f32.mrf.mxu0 }
 0x13e   : > { %v597_v31 = vpop.f32.mrf.mxu1  ;;  %v1115_v36 = vpack.c.bf16 %v481_v28, %v479_v26  ;;  %v485_v40 = vadd.f32 %v484_v30, %v1683_v32 }
 0x13f   : > { %v1116_v37 = vpack.c.bf16 %v594_v29, %v592_v27  ;;  %v486_v38 = vpop.f32.mrf.mxu0  ;;  %v598_v41 = vadd.f32 %v597_v31, %v1685_v33 }
 0x140   : > { %v599_v39 = vpop.f32.mrf.mxu1  ;;  %848 = vst [vmem:[%s1696_s12 + $0x50] sm:$0xff] %v1115_v36  ;;  %v487_v42 = vadd.f32 %v486_v38, %v1687_v34 }
 0x141   : > { %849 = vst [vmem:[%s1696_s12 + $0x58] sm:$0xff] %v1116_v37  ;;  %v600_v43 = vadd.f32 %v599_v39, %v1689_v35  ;;  %v488_v44 = vpop.f32.mrf.mxu0 }
 0x142   : > { %v601_v45 = vpop.f32.mrf.mxu1  ;;  %v1117_v46 = vpack.c.bf16 %v487_v42, %v485_v40  ;;  %v489_v50 = vadd.f32 %v488_v44, %v1683_v32 }
 0x143   : > { %v1118_v47 = vpack.c.bf16 %v600_v43, %v598_v41  ;;  %v490_v48 = vpop.f32.mrf.mxu0  ;;  %v602_v51 = vadd.f32 %v601_v45, %v1685_v33 }
 0x144   : > { %v603_v49 = vpop.f32.mrf.mxu1  ;;  %850 = vst [vmem:[%s1696_s12 + $0x60] sm:$0xff] %v1117_v46  ;;  %v491_v52 = vadd.f32 %v490_v48, %v1687_v34 }
 0x145   : > { %851 = vst [vmem:[%s1696_s12 + $0x68] sm:$0xff] %v1118_v47  ;;  %v604_v53 = vadd.f32 %v603_v49, %v1689_v35  ;;  %v494_v54 = vpop.f32.mrf.mxu0 }
 0x146   : > { %v607_v55 = vpop.f32.mrf.mxu1  ;;  %v1119_v56 = vpack.c.bf16 %v491_v52, %v489_v50  ;;  %v495_v60 = vadd.f32 %v494_v54, %v1683_v32 }
 0x147   : > { %v1120_v57 = vpack.c.bf16 %v604_v53, %v602_v51  ;;  %v496_v58 = vpop.f32.mrf.mxu0  ;;  %v608_v61 = vadd.f32 %v607_v55, %v1685_v33 }
 0x148   : > { %v609_v59 = vpop.f32.mrf.mxu1  ;;  %852 = vst [vmem:[%s1696_s12 + $0x70] sm:$0xff] %v1119_v56  ;;  %v497_v62 = vadd.f32 %v496_v58, %v1687_v34 }
 0x149   : > { %853 = vst [vmem:[%s1696_s12 + $0x78] sm:$0xff] %v1120_v57  ;;  %v610_v63 = vadd.f32 %v609_v59, %v1689_v35  ;;  %v498_v0 = vpop.f32.mrf.mxu0 }
 0x14a   : > { %v611_v1 = vpop.f32.mrf.mxu1  ;;  %v1121_v2 = vpack.c.bf16 %v497_v62, %v495_v60  ;;  %v499_v6 = vadd.f32 %v498_v0, %v1683_v32 }
 0x14b   : > { %v1122_v3 = vpack.c.bf16 %v610_v63, %v608_v61  ;;  %v500_v4 = vpop.f32.mrf.mxu0  ;;  %v612_v7 = vadd.f32 %v611_v1, %v1685_v33 }
 0x14c   : > { %v613_v5 = vpop.f32.mrf.mxu1  ;;  %854 = vst [vmem:[%s1696_s12 + $0x80] sm:$0xff] %v1121_v2  ;;  %v501_v8 = vadd.f32 %v500_v4, %v1687_v34 }
 0x14d   : > { %855 = vst [vmem:[%s1696_s12 + $0x88] sm:$0xff] %v1122_v3  ;;  %v614_v9 = vadd.f32 %v613_v5, %v1689_v35  ;;  %v504_v10 = vpop.f32.mrf.mxu0 }
 0x14e   : > { %v617_v11 = vpop.f32.mrf.mxu1  ;;  %v1123_v12 = vpack.c.bf16 %v501_v8, %v499_v6  ;;  %v505_v16 = vadd.f32 %v504_v10, %v1683_v32 }
 0x14f   : > { %v1124_v13 = vpack.c.bf16 %v614_v9, %v612_v7  ;;  %v506_v14 = vpop.f32.mrf.mxu0  ;;  %v618_v17 = vadd.f32 %v617_v11, %v1685_v33 }
 0x150   : > { %v619_v15 = vpop.f32.mrf.mxu1  ;;  %856 = vst [vmem:[%s1696_s12 + $0x90] sm:$0xff] %v1123_v12  ;;  %v507_v18 = vadd.f32 %v506_v14, %v1687_v34 }
 0x151   : > { %857 = vst [vmem:[%s1696_s12 + $0x98] sm:$0xff] %v1124_v13  ;;  %v620_v19 = vadd.f32 %v619_v15, %v1689_v35  ;;  %v508_v20 = vpop.f32.mrf.mxu0 }
 0x152   : > { %v621_v21 = vpop.f32.mrf.mxu1  ;;  %v1125_v22 = vpack.c.bf16 %v507_v18, %v505_v16  ;;  %v509_v26 = vadd.f32 %v508_v20, %v1683_v32 }
 0x153   : > { %v1126_v23 = vpack.c.bf16 %v620_v19, %v618_v17  ;;  %v510_v24 = vpop.f32.mrf.mxu0  ;;  %v622_v27 = vadd.f32 %v621_v21, %v1685_v33 }
 0x154   : > { %v623_v25 = vpop.f32.mrf.mxu1  ;;  %858 = vst [vmem:[%s1696_s12 + $0xa0] sm:$0xff] %v1125_v22  ;;  %v511_v28 = vadd.f32 %v510_v24, %v1687_v34 }
 0x155   : > { %859 = vst [vmem:[%s1696_s12 + $0xa8] sm:$0xff] %v1126_v23  ;;  %v624_v29 = vadd.f32 %v623_v25, %v1689_v35  ;;  %v514_v30 = vpop.f32.mrf.mxu0 }
 0x156   : > { %v627_v31 = vpop.f32.mrf.mxu1  ;;  %v1127_v36 = vpack.c.bf16 %v511_v28, %v509_v26  ;;  %v515_v40 = vadd.f32 %v514_v30, %v1683_v32 }
 0x157   : > { %v1128_v37 = vpack.c.bf16 %v624_v29, %v622_v27  ;;  %v516_v38 = vpop.f32.mrf.mxu0  ;;  %v628_v41 = vadd.f32 %v627_v31, %v1685_v33 }
 0x158   : > { %v629_v39 = vpop.f32.mrf.mxu1  ;;  %860 = vst [vmem:[%s1696_s12 + $0xb0] sm:$0xff] %v1127_v36  ;;  %v517_v42 = vadd.f32 %v516_v38, %v1687_v34 }
 0x159   : > { %861 = vst [vmem:[%s1696_s12 + $0xb8] sm:$0xff] %v1128_v37  ;;  %v630_v43 = vadd.f32 %v629_v39, %v1689_v35  ;;  %v518_v44 = vpop.f32.mrf.mxu0 }
 0x15a   : > { %v631_v45 = vpop.f32.mrf.mxu1  ;;  %v1129_v46 = vpack.c.bf16 %v517_v42, %v515_v40  ;;  %v519_v50 = vadd.f32 %v518_v44, %v1683_v32 }
 0x15b   : > { %v1130_v47 = vpack.c.bf16 %v630_v43, %v628_v41  ;;  %v520_v48 = vpop.f32.mrf.mxu0  ;;  %v632_v51 = vadd.f32 %v631_v45, %v1685_v33 }
 0x15c   : > { %v633_v49 = vpop.f32.mrf.mxu1  ;;  %862 = vst [vmem:[%s1696_s12 + $0xc0] sm:$0xff] %v1129_v46  ;;  %v521_v52 = vadd.f32 %v520_v48, %v1687_v34 }
 0x15d   : > { %863 = vst [vmem:[%s1696_s12 + $0xc8] sm:$0xff] %v1130_v47  ;;  %v634_v53 = vadd.f32 %v633_v49, %v1689_v35  ;;  %v524_v54 = vpop.f32.mrf.mxu0 }
 0x15e   : > { %v637_v55 = vpop.f32.mrf.mxu1  ;;  %v1131_v56 = vpack.c.bf16 %v521_v52, %v519_v50  ;;  %v525_v60 = vadd.f32 %v524_v54, %v1683_v32 }
 0x15f   : > { %v1132_v57 = vpack.c.bf16 %v634_v53, %v632_v51  ;;  %v526_v58 = vpop.f32.mrf.mxu0  ;;  %v638_v61 = vadd.f32 %v637_v55, %v1685_v33 }
 0x160   : > { %v639_v59 = vpop.f32.mrf.mxu1  ;;  %864 = vst [vmem:[%s1696_s12 + $0xd0] sm:$0xff] %v1131_v56  ;;  %v527_v62 = vadd.f32 %v526_v58, %v1687_v34 }
 0x161   : > { %865 = vst [vmem:[%s1696_s12 + $0xd8] sm:$0xff] %v1132_v57  ;;  %v640_v63 = vadd.f32 %v639_v59, %v1689_v35  ;;  %v528_v0 = vpop.f32.mrf.mxu0 }
 0x162   : > { %v641_v1 = vpop.f32.mrf.mxu1  ;;  %v1133_v2 = vpack.c.bf16 %v527_v62, %v525_v60  ;;  %v529_v6 = vadd.f32 %v528_v0, %v1683_v32 }
 0x163   : > { %v1134_v3 = vpack.c.bf16 %v640_v63, %v638_v61  ;;  %v530_v4 = vpop.f32.mrf.mxu0  ;;  %v642_v7 = vadd.f32 %v641_v1, %v1685_v33 }
 0x164   : > { %v643_v5 = vpop.f32.mrf.mxu1  ;;  %866 = vst [vmem:[%s1696_s12 + $0xe0] sm:$0xff] %v1133_v2  ;;  %v531_v8 = vadd.f32 %v530_v4, %v1687_v34 }
 0x165   : > { %867 = vst [vmem:[%s1696_s12 + $0xe8] sm:$0xff] %v1134_v3  ;;  %v644_v9 = vadd.f32 %v643_v5, %v1689_v35  ;;  %877 = sbr.rel (!%p1596_p5) target bundleno = 391 (0x187), region = 48 }
 0x166   : > { %v1135_v10 = vpack.c.bf16 %v531_v8, %v529_v6 }
 0x167   : > { %v1136_v11 = vpack.c.bf16 %v644_v9, %v642_v7 }
 0x168   : > { %868 = vst [vmem:[%s1696_s12 + $0xf0] sm:$0xff] %v1135_v10 }
 0x169   : > { %869 = vst [vmem:[%s1696_s12 + $0xf8] sm:$0xff] %v1136_v11 }
 0x16a   : > { %s1912_s26 = smov (!%p880_p8, %s879_s26), 8 }
 0x16b   : > { %s1794_s10 = sshll.u32 %s1912_s26, 9 }
 0x16c   : > { %s886_s11 = ssub.s32 4096, %s1794_s10 }
 0x16d   : > { %887 = vsyncadd %s871_s22, %s886_s11  ;;  %p1096_p9 = scmp.ne.s32.totalorder %s1794_s10, 0  ;;  %s1139_s4 = sshll.u32 %s1436_s15, 6 }
 0x16e   : > { %s1142_s20 = smul.u32 144, %s1440_s16  ;;  %s896_s23 = sshll.u32 %s1696_s12, 4  ;;  %s1803_s23 = int_to_ptr.vmem [resolvable:$true] %s896_s23 }
 0x16f   : > { %s1893_s8 = sld [smem:[#allocation18_spill]]  ;;  %s1352_s25 = scalar_lea.vmem %s1803_s23, %s1794_s10 }
 0x170   : > { %s891_s29 = sadd.s32 %s1142_s20, %s1139_s4  ;;  %p1353_p5 = scmp.ne.s32.totalorder %s1803_s23, %s1352_s25 }
 0x171   : > { %s1098_s6 = sshll.u32 %s891_s29, 6  ;;  %s1462_s15 = smov [#allocation9]  }
 0x172   : > { %p1354_p2 = pnand %p1353_p5, %p1096_p9  ;;  %s1356_s16 = sshll.u32 %s1462_s15, 4  ;;  %s1357_s16 = int_to_ptr.vmem [resolvable:$false] %s1356_s16 }
 0x173   : > { %s1358_s30 = scalar_lea.vmem %s1357_s16, 8192  ;;  %p1359_p13 = scmp.lt.s32.totalorder %s1803_s23, %s1357_s16 }
 0x174   : > { %p1355_p12 = pneg %p1354_p2  ;;  %p1360_p3 = scmp.lt.s32.totalorder %s1358_s30, %s1352_s25 }
 0x175   : > { %s1808_s2 = scalar_lea.hbm %s1893_s8, %s1098_s6 }
 0x176   : > { %p1361_p0 = por %p1360_p3, %p1359_p13 }
 0x178   : > { %p1362_p1 = pnand %p1361_p0, %p1355_p12 }
 0x17a   : > { %1365 = shalt.err (!%p1362_p1)
}
 0x17b   : > { %s1366_s5 = scalar_lea.hbm %s1808_s2, %s1794_s10  ;;  %s1370_s12 = scalar_lea.hbm %s1893_s8, 18432 }
 0x17c   : > { %p1367_p4 = scmp.ne.s32.totalorder %s1808_s2, %s1366_s5  ;;  %p1371_p11 = scmp.lt.s32.totalorder %s1808_s2, %s1893_s8 }
 0x17d   : > { %p1372_p7 = scmp.lt.s32.totalorder %s1370_s12, %s1366_s5 }
 0x17e   : > { %p1368_p6 = pnand %p1367_p4, %p1096_p9 }
 0x17f   : > { %p1373_p8 = por %p1372_p7, %p1371_p11 }
 0x180   : > { %p1369_p10 = pneg %p1368_p6 }
 0x182   : > { %p1374_p5 = pnand %p1373_p8, %p1369_p10 }
 0x184   : > { %1377 = shalt.err (!%p1374_p5)
}
 0x185   : > { %s1463_s11 = smov 256   ;;  %s1464_s4 = smov 16  }
 0x186   : > { %902 = dma.vmem_to_hbm [thread:$0]  (%p1096_p9), %s1803_s23, %s1794_s10, %s1808_s2, %s871_s22, %s1463_s11, %s1463_s11, %s1464_s4  }
 0x187 PF: > { %s1894_s20 = sld [smem:[#allocation13_spill]]  ;;  %p1174_p2 = scmp.ge.s32.totalorder %s1452_s19, 2 }
 0x188   : > { %s1895_s29 = sld [smem:[#allocation14_spill]] }
 0x18d   : > { %s911_s6 = sand.u32 1, %s1894_s20  }
 0x18e   : > { %p1896_p12 = scmp.ne.s32.totalorder %s1895_s29, 0  ;;  %s912_s28 = scalar_lea.sflag [#allocation5], %s911_s6 }
 0x190   : > { %p1166_p13 = pnand %p1174_p2, %p1896_p12 }
 0x192   : > { %p1167_p3 = pneg %p1166_p13 }
 0x194   : > { %1419 = dma.done.wait (%p1167_p3), %s912_s28, 4096  }
 0x195   : > { %1421 = vsyncadd (%p1167_p3), %s912_s28, 4294963200  ;;  %s20_s19 = sadd.s32 1, %s1452_s19   ;;  %s1897_s21 = sld [smem:[#allocation15_spill]] }
 0x196   : > { %p17_p0 = scmp.ge.s32.totalorder %s20_s19, 6   ;;  %s1898_s12 = smov %s1428_s13 }
 0x197   : > { %s1899_s13 = smov %s1432_s14  ;;  %s1900_s14 = smov %s1609_s1 }
 0x198   : > { %s1901_s15 = smov %s1444_s17  ;;  %s1902_s16 = smov %s1448_s18 }
 0x199   : > { %s1904_s18 = smov %s1910_s27  ;;  %19 = sbr.rel (!%p17_p0) target bundleno = 12 (0xc), region = 85 }
 0x19b   : > { %s1903_s17 = smov %s1897_s21 }
 0x19e   :  { %917 = vsyncpa [#allocation4], 1 }
 0x19f   :  { %919 = vsyncpa [#allocation4 + $0x1], 1 }
 0x1a0   :  { %920 = vsyncpa [#allocation7], 1 }
 0x1a1   :  { %921 = vsyncpa [#allocation5], 1 }
 0x1a2   :  { %923 = vsyncpa [#allocation5 + $0x1], 1 }

</bundles_post_ra>
